<compile_context>
chip_gen: v6e
topology: v6e:2x2x1
jax: 0.10.0
libtpu: 0.0.40
codegen_flags: <defaults>
</compile_context>

<pallas_src>
import jax
import jax.numpy as jnp
from jax import lax
from jax.experimental import pallas as pl
from jax.experimental.pallas import tpu as pltpu

EPS = 1e-5
LANES = 128


def _make_layernorm_kernel(packed):
    if packed:
        def kernel(x_ref, w_ref, b_ref, s_ref, o_ref):
            # x_ref: (block_rows, 128) lane-packed (G = 128//C original rows per packed row).
            # s_ref: (128, 128) segment-mean matrix (entries 1/C within a C-lane segment).
            x = x_ref[...].astype(jnp.float32)
            seg = s_ref[...]
            # Single-pass moments: the two matmuls are independent -> better overlap.
            mu = jnp.dot(x, seg, preferred_element_type=jnp.float32)
            msq = jnp.dot(x * x, seg, preferred_element_type=jnp.float32)
            var = jnp.maximum(msq - mu * mu, 0.0)      # population variance (unbiased=False)
            y = (x - mu) * lax.rsqrt(var + EPS)        # rsqrt -> EUP slot
            o_ref[...] = (y * w_ref[...] + b_ref[...]).astype(o_ref.dtype)
        return kernel

    def kernel(x_ref, w_ref, b_ref, o_ref):
        # x_ref: (block_rows, C)
        x = x_ref[...].astype(jnp.float32)
        mu = jnp.mean(x, axis=-1, keepdims=True)
        msq = jnp.mean(x * x, axis=-1, keepdims=True)
        var = jnp.maximum(msq - mu * mu, 0.0)          # population variance (unbiased=False)
        y = (x - mu) * lax.rsqrt(var + EPS)
        o_ref[...] = (y * w_ref[...] + b_ref[...]).astype(o_ref.dtype)
    return kernel


def _round_up(n, m):
    return ((n + m - 1) // m) * m


def _vmem_limit_bytes():
    """Generation-aware scoped-VMEM ceiling (leave headroom for compiler scratch)."""
    phys = None
    try:
        phys = int(pltpu.get_tpu_info().vmem_capacity_bytes)
    except Exception:
        phys = None
    if phys is None:
        try:
            kind = jax.devices()[0].device_kind.lower()
        except Exception:
            kind = ""
        if "v7" in kind or "7x" in kind:
            phys = 64 << 20                      # v7x: 64 MiB per TC
        elif any(t in kind for t in ("v4", "v5", "v6")):
            phys = 128 << 20                     # v4/v5e/v6e: 128 MiB
        else:
            phys = 64 << 20                      # conservative unknown default
    return min(int(0.7 * phys), 96 << 20)        # ~45 MiB on v7x, ~90-96 MiB on v5e/v6e


def _pick_block_rows(n_rows, width, in_itemsize, out_itemsize, vmem_limit,
                     target_in_block_bytes=4 << 20):
    # ~2-4 MiB input blocks amortize the ~0.35us per-grid-step overhead
    # (measured tile sweeps only reach ~85% of HBM roofline at >=1-4 MiB tiles).
    br = target_in_block_bytes // (width * in_itemsize)
    # Keep 2x double-buffered input + 2x output + ~4 f32 block temporaries
    # inside ~60% of the scoped-VMEM limit.
    per_row = width * (2 * in_itemsize + 2 * out_itemsize + 4 * 4)
    br = min(br, (6 * vmem_limit // 10) // per_row)
    rnd = max(8, 32 // max(int(in_itemsize), 1))   # 8 for f32, 16 for bf16, 32 for int8/fp8
    if br >= n_rows:
        return max(int(n_rows), 1)                 # one block == full array dim (always legal)
    return max(rnd, int(br // rnd) * rnd)


def withbias_layernorm(x, weight, bias, *, block_rows=None):
    """LayerNorm over last dim with learnable scale + bias (eps=1e-5)."""
    orig_shape = x.shape
    c = orig_shape[-1]
    rows = 1
    for d in orig_shape[:-1]:
        rows *= d

    # Hoist the f32 cast of the (tiny) params out of the kernel hot path.
    w_f32 = weight.astype(jnp.float32).reshape(1, c)
    b_f32 = bias.astype(jnp.float32).reshape(1, c)

    packed = (c < LANES) and (LANES % c == 0) and rows > 0 and (rows % (LANES // c) == 0)

    if packed:
        g = LANES // c
        width = LANES
        n_rows = rows // g
        x2 = x.reshape(n_rows, width)                 # pure row-major view, no copy
        w2 = jnp.tile(w_f32, (1, g))                  # (1, 128): w2[j] = weight[j % c]
        b2 = jnp.tile(b_f32, (1, g))
        seg_id = jnp.arange(width, dtype=jnp.int32) // c
        seg_mat = (seg_id[:, None] == seg_id[None, :]).astype(jnp.float32) * (1.0 / c)
        operands = (x2, w2, b2, seg_mat)
        extra_in_specs = [pl.BlockSpec((width, width), lambda i: (0, 0))]
    else:
        width = c
        n_rows = rows
        x2 = x.reshape(n_rows, width)
        operands = (x2, w_f32, b_f32)
        extra_in_specs = []

    vmem_limit = _vmem_limit_bytes()
    in_itemsize = jnp.dtype(x.dtype).itemsize
    out_itemsize = in_itemsize
    if block_rows is None:
        block_rows = _pick_block_rows(n_rows, width, in_itemsize, out_itemsize, vmem_limit)

    # Partial last block: out-of-range reads are padded, writes are masked,
    # and the math is row-wise, so no wrapper-side padding copy is needed.
    grid = (pl.cdiv(n_rows, block_rows),)

    kernel = _make_layernorm_kernel(packed)

    out = pl.pallas_call(
        kernel,
        out_shape=jax.ShapeDtypeStruct((n_rows, width), x.dtype),
        grid_spec=pltpu.PrefetchScalarGridSpec(
            num_scalar_prefetch=0,
            grid=grid,
            in_specs=[
                pl.BlockSpec((block_rows, width), lambda i: (i, 0)),
                pl.BlockSpec((1, width), lambda i: (0, 0)),
                pl.BlockSpec((1, width), lambda i: (0, 0)),
            ] + extra_in_specs,
            out_specs=pl.BlockSpec((block_rows, width), lambda i: (i, 0)),
        ),
        compiler_params=pltpu.CompilerParams(
            # 1-D streaming grid; independent row blocks marked parallel.
            dimension_semantics=("parallel",),
            vmem_limit_bytes=vmem_limit,
        ),
    )(*operands)

    return out.reshape(orig_shape)


def _reference(x, weight, bias):
    x32 = x.astype(jnp.float32)
    mu = jnp.mean(x32, axis=-1, keepdims=True)
    var = jnp.mean((x32 - mu) ** 2, axis=-1, keepdims=True)
    y = (x32 - mu) / jnp.sqrt(var + EPS) * weight + bias
    return y.astype(x.dtype)


if __name__ == "__main__":
    key = jax.random.PRNGKey(0)
    kx, kw, kb, kx2 = jax.random.split(key, 4)

    # Small-C case (lane-packed path): tokens of shape (batch, seq, hidden).
    B, N, C = 2, 8, 32
    x = jax.random.normal(kx, (B, N, C), dtype=jnp.float32)
    # Module __init__ uses ones/zeros; perturb deterministically so the
    # scale/bias broadcasting path is actually exercised.
    weight = jnp.ones((C,), jnp.float32) + 0.1 * jax.random.normal(kw, (C,), jnp.float32)
    bias = jnp.zeros((C,), jnp.float32) + 0.1 * jax.random.normal(kb, (C,), jnp.float32)

    out = jax.block_until_ready(withbias_layernorm(x, weight, bias))
    ref = _reference(x, weight, bias)
    assert out.shape == x.shape
    assert jnp.max(jnp.abs(out - ref)) < 1e-4

    # Wide-C case (plain row-wise path, no packing).
    C2 = 128
    x_w = jax.random.normal(kx2, (B, N, C2), dtype=jnp.float32)
    w_w = jnp.ones((C2,), jnp.float32)
    b_w = jnp.zeros((C2,), jnp.float32)
    out_w = jax.block_until_ready(withbias_layernorm(x_w, w_w, b_w))
    ref_w = _reference(x_w, w_w, b_w)
    assert jnp.max(jnp.abs(out_w - ref_w)) < 1e-4

    print("KERNEL_OK")
</pallas_src>

<mosaic_0001>
module attributes {stable_mosaic.version = 11 : i64} {
  func.func @kernel(%arg0: i32, %arg1: memref<4x128xf32, #tpu.memory_space<vmem>>, %arg2: memref<1x128xf32, #tpu.memory_space<vmem>>, %arg3: memref<1x128xf32, #tpu.memory_space<vmem>>, %arg4: memref<128x128xf32, #tpu.memory_space<vmem>>, %arg5: memref<4x128xf32, #tpu.memory_space<vmem>>) attributes {dimension_semantics = [#tpu.dimension_semantics<parallel>], iteration_bounds = array<i64: 1>, scalar_prefetch = 0 : i64, scratch_operands = 0 : i64, tpu.core_type = #tpu.core_type<tc>, window_params = [{transform_indices = @transform_0, window_bounds = array<i64: 4, 128>}, {pipeline_mode = #tpu.pipeline_mode<synchronous>, transform_indices = @transform_1, window_bounds = array<i64: 1, 128>}, {pipeline_mode = #tpu.pipeline_mode<synchronous>, transform_indices = @transform_2, window_bounds = array<i64: 1, 128>}, {pipeline_mode = #tpu.pipeline_mode<synchronous>, transform_indices = @transform_3, window_bounds = array<i64: 128, 128>}, {transform_indices = @transform_4, window_bounds = array<i64: 4, 128>}]} {
    %c0 = arith.constant 0 : index
    %c0_0 = arith.constant 0 : index
    %0 = vector.load %arg1[%c0, %c0_0] : memref<4x128xf32, #tpu.memory_space<vmem>>, vector<4x128xf32>
    %c0_1 = arith.constant 0 : index
    %c0_2 = arith.constant 0 : index
    %1 = vector.load %arg4[%c0_1, %c0_2] : memref<128x128xf32, #tpu.memory_space<vmem>>, vector<128x128xf32>
    %cst = arith.constant dense<0.000000e+00> : vector<4x128xf32>
    %2 = tpu.matmul %0, %1, %cst {dimension_numbers = #tpu.dot_dimension_numbers<[1], [0], [0], [1], [0, 0, 1, 1], [], []>} : vector<4x128xf32>, vector<128x128xf32>, vector<4x128xf32> -> vector<4x128xf32>
    %3 = arith.mulf %0, %0 : vector<4x128xf32>
    %cst_3 = arith.constant dense<0.000000e+00> : vector<4x128xf32>
    %4 = tpu.matmul %3, %1, %cst_3 {dimension_numbers = #tpu.dot_dimension_numbers<[1], [0], [0], [1], [0, 0, 1, 1], [], []>} : vector<4x128xf32>, vector<128x128xf32>, vector<4x128xf32> -> vector<4x128xf32>
    %5 = arith.mulf %2, %2 : vector<4x128xf32>
    %6 = arith.subf %4, %5 : vector<4x128xf32>
    %cst_4 = arith.constant 0.000000e+00 : f32
    %7 = vector.broadcast %cst_4 : f32 to vector<4x128xf32>
    %8 = arith.maximumf %6, %7 : vector<4x128xf32>
    %9 = arith.subf %0, %2 : vector<4x128xf32>
    %cst_5 = arith.constant 9.99999974E-6 : f32
    %10 = vector.broadcast %cst_5 : f32 to vector<4x128xf32>
    %11 = arith.addf %8, %10 : vector<4x128xf32>
    %12 = math.rsqrt %11 : vector<4x128xf32>
    %13 = arith.mulf %9, %12 : vector<4x128xf32>
    %c0_6 = arith.constant 0 : index
    %c0_7 = arith.constant 0 : index
    %14 = vector.load %arg2[%c0_6, %c0_7] : memref<1x128xf32, #tpu.memory_space<vmem>>, vector<1x128xf32>
    %15 = vector.broadcast %14 : vector<1x128xf32> to vector<4x128xf32>
    %16 = arith.mulf %13, %15 : vector<4x128xf32>
    %c0_8 = arith.constant 0 : index
    %c0_9 = arith.constant 0 : index
    %17 = vector.load %arg3[%c0_8, %c0_9] : memref<1x128xf32, #tpu.memory_space<vmem>>, vector<1x128xf32>
    %18 = vector.broadcast %17 : vector<1x128xf32> to vector<4x128xf32>
    %19 = arith.addf %16, %18 : vector<4x128xf32>
    %c0_10 = arith.constant 0 : index
    %c0_11 = arith.constant 0 : index
    %20 = vector.load %arg5[%c0_10, %c0_11] : memref<4x128xf32, #tpu.memory_space<vmem>>, vector<4x128xf32>
    tpu.vector_store %arg5[%c0_10, %c0_11], %19 {strides = array<i32>} : memref<4x128xf32, #tpu.memory_space<vmem>>, vector<4x128xf32>,
    return
  }
  func.func @transform_0(%arg0: i32) -> (i32, i32) {
    %c0_i32 = arith.constant 0 : i32
    %c0_i32_0 = arith.constant 0 : i32
    return %arg0, %c0_i32 : i32, i32
  }
  func.func @transform_1(%arg0: i32) -> (i32, i32) {
    %c0_i32 = arith.constant 0 : i32
    %c0_i32_0 = arith.constant 0 : i32
    %c0_i32_1 = arith.constant 0 : i32
    return %c0_i32, %c0_i32_0 : i32, i32
  }
  func.func @transform_2(%arg0: i32) -> (i32, i32) {
    %c0_i32 = arith.constant 0 : i32
    %c0_i32_0 = arith.constant 0 : i32
    %c0_i32_1 = arith.constant 0 : i32
    return %c0_i32, %c0_i32_0 : i32, i32
  }
  func.func @transform_3(%arg0: i32) -> (i32, i32) {
    %c0_i32 = arith.constant 0 : i32
    %c0_i32_0 = arith.constant 0 : i32
    %c0_i32_1 = arith.constant 0 : i32
    return %c0_i32, %c0_i32_0 : i32, i32
  }
  func.func @transform_4(%arg0: i32) -> (i32, i32) {
    %c0_i32 = arith.constant 0 : i32
    %c0_i32_0 = arith.constant 0 : i32
    return %arg0, %c0_i32 : i32, i32
  }
}

</mosaic_0001>

<bundles_post_ra>
// kernel: tpu_custom_call.1
= control target key start
LH: loop header
LB: loop body
LE: loop exit
PB: predicated region body
PF: predicated region fallthrough
CT: control target
= control target key end

     0   :  { %9 = vsyncpa [#allocation3], 0  ;;  %s504_s0 = inlined_call_operand.hbm [shape: f32[4,128], index: 0, kind: input, shape index: {}]   ;;  %s505_s1 = inlined_call_operand.vmem [shape: f32[1,128], index: 1, kind: input, shape index: {}]   ;;  %s506_s2 = inlined_call_operand.vmem [shape: f32[1,128], index: 2, kind: input, shape index: {}]   ;;  %s507_s3 = inlined_call_operand.hbm [shape: f32[128,128], index: 3, kind: input, shape index: {}]   ;;  %s508_s4 = inlined_call_operand.hbm [shape: f32[4,128], index: 4, kind: output, shape index: {}]  }
   0x1   :  { %10 = vsyncpa [#allocation6], 0 }
   0x2   :  { %11 = vsyncpa [#allocation4], 0  ;;  %s423_s15 = smov [#allocation2]   ;;  %s424_s17 = smov [#allocation5]  }
   0x3   :  { %s18_s16 = sshll.u32 %s423_s15, 4  ;;  %s31_s18 = sshll.u32 %s424_s17, 4  ;;  %s19_s16 = int_to_ptr.vmem [resolvable:$true] %s18_s16  ;;  %s32_s18 = int_to_ptr.vmem [resolvable:$true] %s31_s18 }
   0x4   :  { %s365_s19 = scalar_lea.vmem %s19_s16, 64  ;;  %p370_p1 = scmp.lt.s32.totalorder %s19_s16, %s19_s16 }
   0x5   :  { %p366_p0 = scmp.ne.s32.totalorder %s19_s16, %s365_s19  ;;  %p371_p2 = scmp.lt.s32.totalorder %s365_s19, %s365_s19 }
   0x7   :  { %p372_p3 = por %p371_p2, %p370_p1 }
   0x9   :  { %p373_p4 = pnand %p372_p3, %p366_p0 }
   0xb   :  { %376 = shalt.err (!%p373_p4)
}
   0xc   :  { %21 = dma.hbm_to_vmem [thread:$0]  %s504_s0, 64, %s19_s16, [#allocation3]  }
   0xd   :  { %s385_s22 = scalar_lea.vmem %s32_s18, 2048  ;;  %p390_p6 = scmp.lt.s32.totalorder %s32_s18, %s32_s18 }
   0xe   :  { %p386_p5 = scmp.ne.s32.totalorder %s32_s18, %s385_s22  ;;  %p391_p7 = scmp.lt.s32.totalorder %s385_s22, %s385_s22 }
  0x10   :  { %p392_p8 = por %p391_p7, %p390_p6 }
  0x12   :  { %p393_p9 = pnand %p392_p8, %p386_p5 }
  0x14   :  { %396 = shalt.err (!%p393_p9)
}
  0x15   :  { %s425_s23 = smov 128   ;;  %s426_s24 = smov 8  }
  0x16   :  { %37 = dma.hbm_to_vmem [thread:$0]  %s507_s3, 2048, %s32_s18, [#allocation6], %s425_s23, %s425_s23, %s426_s24  }
  0x17   :  { %417 = dma.done.wait [#allocation3], 64  }
  0x18   :  { %418 = vsyncadd [#allocation3], 4294967232 }
  0x19   :  { %419 = dma.done.wait [#allocation6], 2048  }
  0x1a   :  { %420 = vsyncadd [#allocation6], 4294965248  ;;  %v427_v0 = vmov 0.0   ;;  %vm428_vm0 = vmmov 0   ;;  %v60_v1 = vld [vmem:[#allocation5 + $0x78] sm:$0xff]  ;;  %v59_v2 = vld [vmem:[#allocation5 + $0x70] sm:$0xff] }
  0x1b   :  { %278 = vmatprep.subr.mxu0 %v427_v0  ;;  %313 = vmatprep.subr.mxu1 %v427_v0  ;;  %v58_v3 = vld [vmem:[#allocation5 + $0x68] sm:$0xff]  ;;  %v57_v4 = vld [vmem:[#allocation5 + $0x60] sm:$0xff]  ;;  %v56_v5 = vld [vmem:[#allocation5 + $0x58] sm:$0xff]  ;;  %s429_s29 = smov [#allocation7]  }
  0x1c   :  { %310 = vmatprep.mubr.msk.f32.mxu0 %vm428_vm0, %v427_v0  ;;  %345 = vmatprep.mubr.msk.f32.mxu1 %vm428_vm0, %v427_v0  ;;  %v55_v6 = vld [vmem:[#allocation5 + $0x50] sm:$0xff]  ;;  %v54_v7 = vld [vmem:[#allocation5 + $0x48] sm:$0xff]  ;;  %v53_v8 = vld [vmem:[#allocation5 + $0x40] sm:$0xff]  ;;  %s232_s30 = sshll.u32 %s429_s29, 4  ;;  %s233_s30 = int_to_ptr.vmem [resolvable:$true] %s232_s30 }
  0x1d   :  { %279 = vmatpush3.msra.mxu0 %v60_v1  ;;  %314 = vmatpush3.msra.mxu1 %v60_v1  ;;  %v52_v9 = vld [vmem:[#allocation5 + $0x38] sm:$0xff]  ;;  %v51_v10 = vld [vmem:[#allocation5 + $0x30] sm:$0xff]  ;;  %v50_v11 = vld [vmem:[#allocation5 + $0x28] sm:$0xff]  ;;  %s397_s5 = scalar_lea.vmem %s233_s30, 64  ;;  %p402_p11 = scmp.lt.s32.totalorder %s233_s30, %s233_s30 }
  0x1e   :  { %280 = vmatprep.subr.mxu0 %v427_v0  ;;  %315 = vmatprep.subr.mxu1 %v427_v0  ;;  %v49_v12 = vld [vmem:[#allocation5 + $0x20] sm:$0xff]  ;;  %v48_v13 = vld [vmem:[#allocation5 + $0x18] sm:$0xff]  ;;  %v47_v14 = vld [vmem:[#allocation5 + $0x10] sm:$0xff]  ;;  %p398_p10 = scmp.ne.s32.totalorder %s233_s30, %s397_s5  ;;  %p403_p12 = scmp.lt.s32.totalorder %s397_s5, %s397_s5 }
  0x1f   :  { %281 = vmatpush3.msra.mxu0 %v59_v2  ;;  %316 = vmatpush3.msra.mxu1 %v59_v2  ;;  %v44_v15 = vld [vmem:[#allocation2] sm:$0xf]  ;;  %v46_v16 = vld [vmem:[#allocation5 + $0x8] sm:$0xff]  ;;  %v45_v17 = vld [vmem:[#allocation5] sm:$0xff] }
  0x20   :  { %282 = vmatprep.subr.mxu0 %v427_v0  ;;  %317 = vmatprep.subr.mxu1 %v427_v0  ;;  %v131_v18 = vmul.f32 %v44_v15, %v44_v15  ;;  %v242_v29 = vld [vmem:[%s505_s1] ss:$0 sm:$0xff]  ;;  %p404_p13 = por %p403_p12, %p402_p11 }
  0x21   :  { %283 = vmatpush3.msra.mxu0 %v58_v3  ;;  %318 = vmatpush3.msra.mxu1 %v58_v3  ;;  %v243_v31 = vld [vmem:[%s506_s2] ss:$0 sm:$0xff] }
  0x22   :  { %284 = vmatprep.subr.mxu0 %v427_v0  ;;  %319 = vmatprep.subr.mxu1 %v427_v0  ;;  %p405_p0 = pnand %p404_p13, %p398_p10 }
  0x23   :  { %285 = vmatpush3.msra.mxu0 %v57_v4  ;;  %320 = vmatpush3.msra.mxu1 %v57_v4 }
  0x24   :  { %286 = vmatprep.subr.mxu0 %v427_v0  ;;  %321 = vmatprep.subr.mxu1 %v427_v0 }
  0x25   :  { %287 = vmatpush3.msra.mxu0 %v56_v5  ;;  %322 = vmatpush3.msra.mxu1 %v56_v5 }
  0x26   :  { %288 = vmatprep.subr.mxu0 %v427_v0  ;;  %323 = vmatprep.subr.mxu1 %v427_v0 }
  0x27   :  { %289 = vmatpush3.msra.mxu0 %v55_v6  ;;  %324 = vmatpush3.msra.mxu1 %v55_v6 }
  0x28   :  { %290 = vmatprep.subr.mxu0 %v427_v0  ;;  %325 = vmatprep.subr.mxu1 %v427_v0 }
  0x29   :  { %291 = vmatpush3.msra.mxu0 %v54_v7  ;;  %326 = vmatpush3.msra.mxu1 %v54_v7 }
  0x2a   :  { %292 = vmatprep.subr.mxu0 %v427_v0  ;;  %327 = vmatprep.subr.mxu1 %v427_v0 }
  0x2b   :  { %293 = vmatpush3.msra.mxu0 %v53_v8  ;;  %328 = vmatpush3.msra.mxu1 %v53_v8 }
  0x2c   :  { %294 = vmatprep.subr.mxu0 %v427_v0  ;;  %329 = vmatprep.subr.mxu1 %v427_v0 }
  0x2d   :  { %295 = vmatpush3.msra.mxu0 %v52_v9  ;;  %330 = vmatpush3.msra.mxu1 %v52_v9 }
  0x2e   :  { %296 = vmatprep.subr.mxu0 %v427_v0  ;;  %331 = vmatprep.subr.mxu1 %v427_v0 }
  0x2f   :  { %297 = vmatpush3.msra.mxu0 %v51_v10  ;;  %332 = vmatpush3.msra.mxu1 %v51_v10 }
  0x30   :  { %298 = vmatprep.subr.mxu0 %v427_v0  ;;  %333 = vmatprep.subr.mxu1 %v427_v0 }
  0x31   :  { %299 = vmatpush3.msra.mxu0 %v50_v11  ;;  %334 = vmatpush3.msra.mxu1 %v50_v11 }
  0x32   :  { %300 = vmatprep.subr.mxu0 %v427_v0  ;;  %335 = vmatprep.subr.mxu1 %v427_v0 }
  0x33   :  { %301 = vmatpush3.msra.mxu0 %v49_v12  ;;  %336 = vmatpush3.msra.mxu1 %v49_v12 }
  0x34   :  { %302 = vmatprep.subr.mxu0 %v427_v0  ;;  %337 = vmatprep.subr.mxu1 %v427_v0 }
  0x35   :  { %303 = vmatpush3.msra.mxu0 %v48_v13  ;;  %338 = vmatpush3.msra.mxu1 %v48_v13 }
  0x36   :  { %304 = vmatprep.subr.mxu0 %v427_v0  ;;  %339 = vmatprep.subr.mxu1 %v427_v0 }
  0x37   :  { %305 = vmatpush3.msra.mxu0 %v47_v14  ;;  %340 = vmatpush3.msra.mxu1 %v47_v14 }
  0x38   :  { %306 = vmatprep.subr.mxu0 %v427_v0  ;;  %341 = vmatprep.subr.mxu1 %v427_v0 }
  0x39   :  { %307 = vmatpush3.msra.mxu0 %v46_v16  ;;  %342 = vmatpush3.msra.mxu1 %v46_v16 }
  0x3a   :  { %308 = vmatprep.subr.mxu0 %v427_v0  ;;  %343 = vmatprep.subr.mxu1 %v427_v0 }
  0x3b   :  { %309 = vmatpush3.msra.mxu0 %v45_v17  ;;  %344 = vmatpush3.msra.mxu1 %v45_v17 }
  0x3c   :  { %311 = vmatmul.mubr.f32.vlgmr.msra.gmra.mxu0 %v44_v15  ;;  %346 = vmatmul.mubr.f32.vlgmr.msra.gmra.mxu1 %v131_v18 }
  0xfc   :  { %v127_v19 = vpop.f32.mrf.mxu0  ;;  %v198_v20 = vpop.f32.mrf.mxu1 }
  0xfd   :  { %v202_v21 = vmul.f32 %v127_v19, %v127_v19  ;;  %v205_v27 = vsub.f32 %v44_v15, %v127_v19 }
  0xfe   :  { %v312_v22 = vpop.f32.mrf.mxu0  ;;  %v347_v23 = vpop.f32.mrf.mxu1 }
  0xff   :  { %v203_v24 = vsub.f32 %v198_v20, %v202_v21 }
 0x101   :  { %v204_v25 = vmax.f32 %v203_v24, 0.0 }
 0x103   :  { %v206_v26 = vadd.f32 1e-05, %v204_v25 }
 0x105   :  { %355 = vrsqrt.f32 %v206_v26 }
 0x112   :  { %v356_v28 = vpop.eup %355 }
 0x113   :  { %v208_v30 = vmul.f32 %v356_v28, %v205_v27 }
 0x115   :  { %v216_v32 = vmul.f32 %v242_v29, %v208_v30 }
 0x117   :  { %v224_v33 = vadd.f32 %v243_v31, %v216_v32 }
 0x119   :  { %225 = vst [vmem:[#allocation7] sm:$0xf] %v224_v33 }
 0x11a   :  { %408 = shalt.err (!%p405_p0)
}
 0x11b   :  { %235 = dma.vmem_to_hbm [thread:$0]  %s233_s30, 64, %s508_s4, [#allocation4]  }
 0x11c   :  { %421 = dma.done.wait [#allocation4], 64  }
 0x11d   :  { %422 = vsyncadd [#allocation4], 4294967232 }
 0x11e   :  { %239 = vsyncpa [#allocation3], 1 }
 0x11f   :  { %240 = vsyncpa [#allocation6], 1 }
 0x120   :  { %241 = vsyncpa [#allocation4], 1 }

</bundles_post_ra>
